<compile_context>
chip_gen: v7x
topology: tpu7x:2x2x1
jax: 0.10.0
libtpu: 0.0.40
codegen_flags: <defaults>
</compile_context>

<pallas_src>
import numpy as np
import jax
import jax.numpy as jnp
from jax.experimental import pallas as pl
from jax.experimental.pallas import tpu as pltpu


# ------------------------------ sizing helpers ------------------------------
def _round_up(n, m):
    return -(-n // m) * m


def _tpu_vmem_capacity():
    try:
        return int(getattr(pltpu.get_tpu_info(), "vmem_capacity_bytes"))
    except Exception:
        return 128 * 1024 * 1024


_VMEM_CAP = _tpu_vmem_capacity()
_VMEM_LIMIT = int(min(_VMEM_CAP // 2, 96 * 1024 * 1024))   # scoped limit per kernel
_VMEM_BUDGET = _VMEM_LIMIT // 2                            # tile-picker budget (headroom)


def _choose_block(n, candidates, row_bytes, budget):
    """Largest candidate whose double-buffered footprint fits `budget`; pads n up to a
    multiple of the chosen block (never falls back to an unbounded single block)."""
    usable = [c for c in candidates if c <= max(n, candidates[-1])]
    blk = usable[-1]
    for c in usable:
        if 2 * c * row_bytes <= budget:
            blk = c
            break
    return blk, _round_up(n, blk)


def _num_tensorcores():
    # v7x has 2 TensorCores per chip; used to decide GRU batch-splitting.
    try:
        kind = jax.devices()[0].device_kind.lower()
        if "v7" in kind:
            return 2
    except Exception:
        pass
    return 1


def _leaves_uniform(leaves):
    """GRAM convention: each leaves row repeats the same leaf index A times."""
    try:
        lv = np.asarray(leaves)
    except Exception:                 # traced -> cannot verify, use general path
        return False
    return lv.ndim == 2 and lv.shape[1] > 0 and bool(np.all(lv == lv[:, :1]))


# ------------------------------ attention kernel ------------------------------
def _attention_kernel(leaf_ref, anc_ref, w1_ref, w2_ref, b_ref, v_ref, amask_ref,
                      out_ref):
    # anc_ref: (nb, A, E) bf16; leaf_ref: (nb, E) bf16 (deduped) or (nb, A, E) bf16
    # w1/w2: (E, D) bf16; b/v: (1, D) f32; amask: (1, A, 1) f32 additive (-1e30 on pad)
    nb, a, e = anc_ref.shape
    d = w1_ref.shape[1]
    anc2 = anc_ref[...].reshape(nb * a, e)
    proj_a = jnp.dot(anc2, w2_ref[...], preferred_element_type=jnp.float32)   # (nb*a, d)
    if len(leaf_ref.shape) == 2:
        # de-duplicated leaf branch: one (nb, E) x (E, D) matmul, broadcast over A
        proj_l = jnp.dot(leaf_ref[...], w1_ref[...],
                         preferred_element_type=jnp.float32)                  # (nb, d)
        pre = proj_a.reshape(nb, a, d) + proj_l[:, None, :]
    else:
        leaf2 = leaf_ref[...].reshape(nb * a, e)
        pre = (proj_a + jnp.dot(leaf2, w1_ref[...],
                                preferred_element_type=jnp.float32)).reshape(nb, a, d)
    mlp = jnp.tanh(pre + b_ref[...])                                          # (nb, a, d)
    score = jnp.sum(mlp * v_ref[...], axis=-1, keepdims=True) + amask_ref[...]
    m = jnp.max(score, axis=1, keepdims=True)                 # per-leaf max (stable)
    ex = jnp.exp(score - m)
    att = ex / jnp.sum(ex, axis=1, keepdims=True)             # (nb, a, 1)
    out_ref[...] = jnp.sum(anc_ref[...] * att, axis=1)        # (nb, E) f32


def attention_group(W_emb, leaves, ancestors, W_att, b_att, v_att):
    N, A = leaves.shape
    E = W_emb.shape[1]
    D = W_att.shape[1]
    A_pad = max(8, _round_up(A, 8))
    if A_pad != A:
        ancestors = jnp.pad(ancestors, ((0, 0), (0, A_pad - A)))
    amask = jnp.concatenate(
        [jnp.zeros((A,), jnp.float32), jnp.full((A_pad - A,), -1e30, jnp.float32)]
    ).reshape(1, A_pad, 1)

    # bf16 gathers: halve the HBM round-trip bytes for the gathered embeddings and feed
    # the MXU bf16 (f32 accumulation).  The (N,A,E) -> VMEM DMA itself stays XLA glue.
    W_emb_bf = W_emb.astype(jnp.bfloat16)
    uniform = _leaves_uniform(leaves)
    if uniform:
        leaf_emb = jnp.take(W_emb_bf, jnp.asarray(leaves)[:, 0], axis=0)     # (N, E)
    else:
        lv = leaves if A_pad == A else jnp.pad(leaves, ((0, 0), (0, A_pad - A)))
        leaf_emb = jnp.take(W_emb_bf, lv, axis=0)                            # (N, A_pad, E)
    anc_emb = jnp.take(W_emb_bf, ancestors, axis=0)                          # (N, A_pad, E)

    leaf_row = E * 2 if uniform else A_pad * E * 2
    row_bytes = A_pad * E * 2 + leaf_row + E * 4
    nblk, N_pad = _choose_block(N, (512, 256, 128, 64, 32, 16, 8), row_bytes,
                                _VMEM_BUDGET)
    if N_pad != N:
        leaf_emb = jnp.pad(leaf_emb, ((0, N_pad - N),) + ((0, 0),) * (leaf_emb.ndim - 1))
        anc_emb = jnp.pad(anc_emb, ((0, N_pad - N), (0, 0), (0, 0)))

    leaf_spec = (pl.BlockSpec((nblk, E), lambda n: (n, 0)) if uniform
                 else pl.BlockSpec((nblk, A_pad, E), lambda n: (n, 0, 0)))

    out = pl.pallas_call(
        _attention_kernel,
        out_shape=jax.ShapeDtypeStruct((N_pad, E), jnp.float32),
        grid=(N_pad // nblk,),
        in_specs=[
            leaf_spec,
            pl.BlockSpec((nblk, A_pad, E), lambda n: (n, 0, 0)),
            pl.BlockSpec((E, D), lambda n: (0, 0)),
            pl.BlockSpec((E, D), lambda n: (0, 0)),
            pl.BlockSpec((1, D), lambda n: (0, 0)),
            pl.BlockSpec((1, D), lambda n: (0, 0)),
            pl.BlockSpec((1, A_pad, 1), lambda n: (0, 0, 0)),
        ],
        out_specs=pl.BlockSpec((nblk, E), lambda n: (n, 0)),
        compiler_params=pltpu.CompilerParams(
            dimension_semantics=("parallel",), vmem_limit_bytes=_VMEM_LIMIT),
    )(leaf_emb, anc_emb,
      W_att[:E].astype(jnp.bfloat16), W_att[E:].astype(jnp.bfloat16),
      b_att.reshape(1, D), v_att.reshape(1, D), amask)
    return out[:N] if N_pad != N else out


# -------------------- time-parallel input projection kernel --------------------
def _inproj_kernel(x_ref, emb_ref, wih_ref, bih_ref, out_ref, acc_ref):
    # x: (tm, kv) bf16; emb: (kv, E) bf16; wih: (E, 3H) bf16; bih: (1, 3H) f32
    k = pl.program_id(1)

    @pl.when(k == 0)
    def _():
        acc_ref[...] = jnp.zeros_like(acc_ref)

    acc_ref[...] += jnp.dot(x_ref[...], emb_ref[...],
                            preferred_element_type=jnp.float32)

    @pl.when(k == pl.num_programs(1) - 1)
    def _():
        xe = jnp.tanh(acc_ref[...]).astype(jnp.bfloat16)
        out_ref[...] = jnp.dot(xe, wih_ref[...],
                               preferred_element_type=jnp.float32) + bih_ref[...]


def input_projection(x2d, emb, W_ih, b_i):
    M, V = x2d.shape
    E = emb.shape[1]
    H3 = W_ih.shape[1]

    x_bf = x2d.astype(jnp.bfloat16)
    emb_bf = emb.astype(jnp.bfloat16)
    wih_bf = W_ih.astype(jnp.bfloat16)

    # K-tile the vocabulary reduction so the x row-tile / emb tile stay VMEM-bounded.
    if V <= 1024:
        kv, V_pad = V, V
    else:
        kv = 512
        V_pad = _round_up(V, kv)
    if V_pad != V:
        x_bf = jnp.pad(x_bf, ((0, 0), (0, V_pad - V)))
        emb_bf = jnp.pad(emb_bf, ((0, V_pad - V), (0, 0)))

    row_bytes = kv * 2 + H3 * 4 + E * 4
    tm, M_pad = _choose_block(M, (1024, 512, 256, 128, 64, 32, 16, 8), row_bytes,
                              _VMEM_BUDGET)
    if M_pad != M:
        x_bf = jnp.pad(x_bf, ((0, M_pad - M), (0, 0)))

    out = pl.pallas_call(
        _inproj_kernel,
        out_shape=jax.ShapeDtypeStruct((M_pad, H3), jnp.float32),
        grid=(M_pad // tm, V_pad // kv),
        in_specs=[pl.BlockSpec((tm, kv), lambda i, k: (i, k)),
                  pl.BlockSpec((kv, E), lambda i, k: (k, 0)),
                  pl.BlockSpec((E, H3), lambda i, k: (0, 0)),
                  pl.BlockSpec((1, H3), lambda i, k: (0, 0))],
        out_specs=pl.BlockSpec((tm, H3), lambda i, k: (i, 0)),
        scratch_shapes=[pltpu.VMEM((tm, E), jnp.float32)],
        compiler_params=pltpu.CompilerParams(
            dimension_semantics=("parallel", "arbitrary"),
            vmem_limit_bytes=_VMEM_LIMIT),
    )(x_bf, emb_bf, wih_bf, b_i)
    return out[:M] if M_pad != M else out


# ------------------- fused GRU (recurrent part) + output softmax ----------------
def _gru_out_kernel(xr_ref, xz_ref, xn_ref, mask_ref,
                    whr_ref, whz_ref, whn_ref, bhn_ref,
                    wout_ref, bout_ref, y_ref, h_scratch):
    # xr/xz/xn: (Tb, Bb, H) precomputed x-side gate inputs (bias included)
    @pl.when(pl.program_id(1) == 0)
    def _():
        h_scratch[...] = jnp.zeros_like(h_scratch)

    tb = xr_ref.shape[0]

    def step(tl, h):
        hr = jnp.dot(h, whr_ref[...], preferred_element_type=jnp.float32)
        hz = jnp.dot(h, whz_ref[...], preferred_element_type=jnp.float32)
        hn = jnp.dot(h, whn_ref[...], preferred_element_type=jnp.float32)
        r = jax.nn.sigmoid(xr_ref[tl] + hr)
        z = jax.nn.sigmoid(xz_ref[tl] + hz)
        n = jnp.tanh(xn_ref[tl] + r * (hn + bhn_ref[...]))
        h_new = (1.0 - z) * n + z * h
        # fused output epilogue: softmax(h_new @ W_out + b_out) * mask_t
        logits = jnp.dot(h_new, wout_ref[...],
                         preferred_element_type=jnp.float32) + bout_ref[...]
        m = jnp.max(logits, axis=1, keepdims=True)            # overflow-safe
        e = jnp.exp(logits - m)
        denom = jnp.sum(e, axis=1, keepdims=True)
        y_ref[tl] = e * pl.reciprocal(denom, approx=True) * mask_ref[tl]
        return h_new

    # Multiple timesteps per grid step amortize per-step overhead; unrolled so the
    # LLO scheduler sees the whole block.
    h_scratch[...] = jax.lax.fori_loop(0, tb, step, h_scratch[...], unroll=True)


def gru_output(xr, xz, xn, mask3, W_hr, W_hz, W_hn, b_hn, W_out, b_out):
    T, B_pad, H = xr.shape
    C_pad = W_out.shape[1]

    # v7x: shard the (batch-independent) sequential recurrence across the 2 TCs.
    n_cores = _num_tensorcores()
    nbb = 2 if (n_cores == 2 and B_pad % 2 == 0 and (B_pad // 2) >= 8) else 1
    Bb = B_pad // nbb

    row_bytes = Bb * (3 * H * 4 + 4 + C_pad * 4)
    Tb, T_pad = _choose_block(T, (64, 32, 16, 8, 4, 2, 1), row_bytes, _VMEM_BUDGET)
    if T_pad != T:
        pad = ((0, T_pad - T), (0, 0), (0, 0))
        xr, xz, xn = jnp.pad(xr, pad), jnp.pad(xz, pad), jnp.pad(xn, pad)
        mask3 = jnp.pad(mask3, pad)

    y = pl.pallas_call(
        _gru_out_kernel,
        out_shape=jax.ShapeDtypeStruct((T_pad, B_pad, C_pad), jnp.float32),
        grid=(nbb, T_pad // Tb),
        in_specs=[
            pl.BlockSpec((Tb, Bb, H), lambda b, t: (t, b, 0)),
            pl.BlockSpec((Tb, Bb, H), lambda b, t: (t, b, 0)),
            pl.BlockSpec((Tb, Bb, H), lambda b, t: (t, b, 0)),
            pl.BlockSpec((Tb, Bb, 1), lambda b, t: (t, b, 0)),
            pl.BlockSpec((H, H), lambda b, t: (0, 0)),
            pl.BlockSpec((H, H), lambda b, t: (0, 0)),
            pl.BlockSpec((H, H), lambda b, t: (0, 0)),
            pl.BlockSpec((1, H), lambda b, t: (0, 0)),
            pl.BlockSpec((H, C_pad), lambda b, t: (0, 0)),
            pl.BlockSpec((1, C_pad), lambda b, t: (0, 0)),
        ],
        # streamed per-block output: writeback overlaps the next block's compute and
        # nothing (T,B,C)-sized stays resident in VMEM.
        out_specs=pl.BlockSpec((Tb, Bb, C_pad), lambda b, t: (t, b, 0)),
        scratch_shapes=[pltpu.VMEM((Bb, H), jnp.float32)],
        # time axis MUST stay "arbitrary": the hidden-state carry is sequential.
        compiler_params=pltpu.CompilerParams(
            dimension_semantics=("parallel", "arbitrary"),
            vmem_limit_bytes=_VMEM_LIMIT),
    )(xr, xz, xn, mask3, W_hr, W_hz, W_hn, b_hn, W_out, b_out)
    return y[:T] if T_pad != T else y


# ------------------------------ full GRAM forward ------------------------------
def gram_forward_pallas(params, x, mask, leavesList, ancestorsList):
    embList = [
        attention_group(params["W_emb"], lv, an,
                        params["W_att"], params["b_att"], params["v_att"])
        for lv, an in zip(leavesList, ancestorsList)
    ]
    emb = jnp.concatenate(embList, axis=0)            # (inputDimSize, embDim) f32

    T, B, V = x.shape
    H = params["W_hr"].shape[0]
    C = params["W_out"].shape[1]

    # Fused input-side gate weights (E, 3H) + biases; recurrent weights stay separate
    # (H, H) refs so the GRU kernel never slices inside a 128-lane vreg.
    W_ih = jnp.concatenate([params["W_ir"], params["W_iz"], params["W_in"]], axis=1)
    b_i = jnp.concatenate([params["b_r"], params["b_z"], params["b_in"]]).reshape(1, 3 * H)

    # Pad batch to a sublane multiple so every sequential step uses full sublanes.
    B_pad = max(8, _round_up(B, 8))
    if B_pad != B:
        x_p = jnp.pad(x, ((0, 0), (0, B_pad - B), (0, 0)))
        mask_p = jnp.pad(mask, ((0, 0), (0, B_pad - B)))
    else:
        x_p, mask_p = x, mask

    # Time-parallel input projection (hoisted out of the sequential GRU loop).
    x_proj = input_projection(x_p.reshape(T * B_pad, V), emb, W_ih, b_i)
    x_proj = x_proj.reshape(T, B_pad, 3 * H)
    xr, xz, xn = x_proj[..., :H], x_proj[..., H:2 * H], x_proj[..., 2 * H:]

    # Lane-dense output: pad classes to a 128 multiple; padded logits get -1e30 bias so
    # exp() underflows to exactly 0 and the softmax is unchanged.
    C_pad = _round_up(C, 128)
    W_out = params["W_out"]
    b_out = params["b_out"]
    if C_pad != C:
        W_out = jnp.pad(W_out, ((0, 0), (0, C_pad - C)))
        b_out = jnp.concatenate([b_out, jnp.full((C_pad - C,), -1e30, jnp.float32)])

    # TODO(synk): F.dropout on `hidden` with dropout_rate=0.0 is an identity; a
    # stochastic dropout would need pltpu.prng_* inside the GRU epilogue.
    y_pad = gru_output(xr, xz, xn, mask_p.reshape(T, B_pad, 1),
                       params["W_hr"], params["W_hz"], params["W_hn"],
                       params["b_hn"].reshape(1, H), W_out, b_out.reshape(1, C_pad))
    return y_pad[:, :B, :C]


# ------------------------------ pure-JAX reference -----------------------------
def gram_forward_reference(params, x, mask, leavesList, ancestorsList):
    embList = []
    for leaves, ancestors in zip(leavesList, ancestorsList):
        leave_tmp = params["W_emb"][leaves]
        anc_tmp = params["W_emb"][ancestors]
        attentionInput = jnp.concatenate([leave_tmp, anc_tmp], axis=2)
        mlp = jnp.tanh(attentionInput @ params["W_att"] + params["b_att"])
        pre = mlp @ params["v_att"]
        att = jax.nn.softmax(pre, axis=1)
        embList.append((anc_tmp * att[:, :, None]).sum(axis=1))
    emb = jnp.concatenate(embList, axis=0)
    x_emb = jnp.tanh(x @ emb)
    T, B, E = x_emb.shape
    H = params["W_hr"].shape[0]
    h = jnp.zeros((B, H), jnp.float32)
    outs = []
    for t in range(T):
        xt = x_emb[t]
        r = jax.nn.sigmoid(xt @ params["W_ir"] + h @ params["W_hr"] + params["b_r"])
        z = jax.nn.sigmoid(xt @ params["W_iz"] + h @ params["W_hz"] + params["b_z"])
        n = jnp.tanh(xt @ params["W_in"] + params["b_in"]
                     + r * (h @ params["W_hn"] + params["b_hn"]))
        h = (1.0 - z) * n + z * h
        outs.append(h)
    hidden = jnp.stack(outs, axis=0)
    nom = jnp.exp(hidden @ params["W_out"] + params["b_out"])
    denom = jnp.sum(nom, 2, keepdims=True)
    return (nom / denom) * mask[:, :, None]


if __name__ == "__main__":
    inputDimSize = 16
    numAncestors = 8
    embDimSize = 32
    hiddenDimSize = 32
    attentionDimSize = 16
    numClass = 8
    seqLen = 8
    batch = 2

    key = jax.random.PRNGKey(0)
    ks = jax.random.split(key, 12)
    V = inputDimSize + numAncestors
    H = hiddenDimSize

    W_emb = jax.random.uniform(ks[0], (V, embDimSize), jnp.float32)
    W_att = jax.random.uniform(ks[1], (2 * embDimSize, attentionDimSize), jnp.float32)
    b_att = jnp.zeros((attentionDimSize,), jnp.float32)
    v_att = jax.random.uniform(ks[2], (attentionDimSize,), jnp.float32)

    k = 1.0 / np.sqrt(hiddenDimSize)
    w_ih = jax.random.uniform(ks[3], (3 * H, embDimSize), jnp.float32, -k, k)
    w_hh = jax.random.uniform(ks[4], (3 * H, H), jnp.float32, -k, k)
    b_ih = jax.random.uniform(ks[5], (3 * H,), jnp.float32, -k, k)
    b_hh = jax.random.uniform(ks[6], (3 * H,), jnp.float32, -k, k)

    params = {
        "W_emb": W_emb, "W_att": W_att, "b_att": b_att, "v_att": v_att,
        "W_ir": w_ih[0:H].T, "W_iz": w_ih[H:2 * H].T, "W_in": w_ih[2 * H:3 * H].T,
        "W_hr": w_hh[0:H].T, "W_hz": w_hh[H:2 * H].T, "W_hn": w_hh[2 * H:3 * H].T,
        "b_r": b_ih[0:H] + b_hh[0:H],
        "b_z": b_ih[H:2 * H] + b_hh[H:2 * H],
        "b_in": b_ih[2 * H:3 * H],
        "b_hn": b_hh[2 * H:3 * H],
        "W_out": jax.random.uniform(ks[7], (H, numClass), jnp.float32),
        "b_out": jnp.zeros((numClass,), jnp.float32),
    }

    # knowledge-DAG groups: leaves (N, A) index matrices; concatenation of group
    # outputs covers all inputDimSize leaf codes in order (GRAM convention).
    leaves0 = np.repeat(np.arange(0, 8, dtype=np.int32)[:, None], 8, axis=1)
    anc0 = np.array(jax.random.randint(ks[8], (8, 8), inputDimSize, V, dtype=jnp.int32))
    anc0[:, 0] = np.arange(0, 8, dtype=np.int32)          # first ancestor = leaf itself
    leaves1 = np.repeat(np.arange(8, 16, dtype=np.int32)[:, None], 4, axis=1)
    anc1 = np.array(jax.random.randint(ks[9], (8, 4), inputDimSize, V, dtype=jnp.int32))
    anc1[:, 0] = np.arange(8, 16, dtype=np.int32)
    leavesList = [jnp.asarray(leaves0), jnp.asarray(leaves1)]
    ancestorsList = [jnp.asarray(anc0), jnp.asarray(anc1)]

    x = jax.random.uniform(ks[10], (seqLen, batch, inputDimSize), jnp.float32)
    mask_np = np.ones((seqLen, batch), np.float32)
    mask_np[6:, 1] = 0.0
    mask = jnp.asarray(mask_np)

    y = gram_forward_pallas(params, x, mask, leavesList, ancestorsList)
    y = jax.block_until_ready(y)

    y_ref = gram_forward_reference(params, x, mask, leavesList, ancestorsList)
    np.testing.assert_allclose(np.asarray(y), np.asarray(y_ref), rtol=1e-2, atol=1e-2)

    print("KERNEL_OK")
</pallas_src>

<mosaic_0001>
module attributes {stable_mosaic.version = 11 : i64} {
  func.func @_attention_kernel(%arg0: i32, %arg1: memref<8x32xbf16, #tpu.memory_space<vmem>>, %arg2: memref<8x8x32xbf16, #tpu.memory_space<vmem>>, %arg3: memref<32x16xbf16, #tpu.memory_space<vmem>>, %arg4: memref<32x16xbf16, #tpu.memory_space<vmem>>, %arg5: memref<1x16xf32, #tpu.memory_space<vmem>>, %arg6: memref<1x16xf32, #tpu.memory_space<vmem>>, %arg7: memref<1x8x1xf32, #tpu.memory_space<vmem>>, %arg8: memref<8x32xf32, #tpu.memory_space<vmem>>) attributes {dimension_semantics = [#tpu.dimension_semantics<parallel>], iteration_bounds = array<i64: 1>, scalar_prefetch = 0 : i64, scratch_operands = 0 : i64, tpu.core_type = #tpu.core_type<tc>, window_params = [{transform_indices = @transform_0, window_bounds = array<i64: 8, 32>}, {transform_indices = @transform_1, window_bounds = array<i64: 8, 8, 32>}, {pipeline_mode = #tpu.pipeline_mode<synchronous>, transform_indices = @transform_2, window_bounds = array<i64: 32, 16>}, {pipeline_mode = #tpu.pipeline_mode<synchronous>, transform_indices = @transform_3, window_bounds = array<i64: 32, 16>}, {pipeline_mode = #tpu.pipeline_mode<synchronous>, transform_indices = @transform_4, window_bounds = array<i64: 1, 16>}, {pipeline_mode = #tpu.pipeline_mode<synchronous>, transform_indices = @transform_5, window_bounds = array<i64: 1, 16>}, {pipeline_mode = #tpu.pipeline_mode<synchronous>, transform_indices = @transform_6, window_bounds = array<i64: 1, 8, 1>}, {transform_indices = @transform_7, window_bounds = array<i64: 8, 32>}]} {
    %c0 = arith.constant 0 : index
    %c0_0 = arith.constant 0 : index
    %c0_1 = arith.constant 0 : index
    %0 = vector.load %arg2[%c0, %c0_0, %c0_1] : memref<8x8x32xbf16, #tpu.memory_space<vmem>>, vector<8x8x32xbf16>
    %1 = vector.shape_cast %0 : vector<8x8x32xbf16> to vector<64x32xbf16>
    %c0_2 = arith.constant 0 : index
    %c0_3 = arith.constant 0 : index
    %2 = vector.load %arg4[%c0_2, %c0_3] : memref<32x16xbf16, #tpu.memory_space<vmem>>, vector<32x16xbf16>
    %cst = arith.constant dense<0.000000e+00> : vector<64x16xf32>
    %3 = tpu.matmul %1, %2, %cst {dimension_numbers = #tpu.dot_dimension_numbers<[1], [0], [0], [1], [0, 0, 1, 1], [], []>} : vector<64x32xbf16>, vector<32x16xbf16>, vector<64x16xf32> -> vector<64x16xf32>
    %c0_4 = arith.constant 0 : index
    %c0_5 = arith.constant 0 : index
    %4 = vector.load %arg1[%c0_4, %c0_5] : memref<8x32xbf16, #tpu.memory_space<vmem>>, vector<8x32xbf16>
    %c0_6 = arith.constant 0 : index
    %c0_7 = arith.constant 0 : index
    %5 = vector.load %arg3[%c0_6, %c0_7] : memref<32x16xbf16, #tpu.memory_space<vmem>>, vector<32x16xbf16>
    %cst_8 = arith.constant dense<0.000000e+00> : vector<8x16xf32>
    %6 = tpu.matmul %4, %5, %cst_8 {dimension_numbers = #tpu.dot_dimension_numbers<[1], [0], [0], [1], [0, 0, 1, 1], [], []>} : vector<8x32xbf16>, vector<32x16xbf16>, vector<8x16xf32> -> vector<8x16xf32>
    %7 = vector.shape_cast %3 : vector<64x16xf32> to vector<8x8x16xf32>
    %8 = vector.shape_cast %6 : vector<8x16xf32> to vector<8x1x16xf32>
    %9 = vector.broadcast %8 : vector<8x1x16xf32> to vector<8x8x16xf32>
    %10 = arith.addf %7, %9 : vector<8x8x16xf32>
    %c0_9 = arith.constant 0 : index
    %c0_10 = arith.constant 0 : index
    %11 = vector.load %arg5[%c0_9, %c0_10] : memref<1x16xf32, #tpu.memory_space<vmem>>, vector<1x16xf32>
    %12 = vector.shape_cast %11 : vector<1x16xf32> to vector<1x1x16xf32>
    %13 = vector.broadcast %12 : vector<1x1x16xf32> to vector<8x8x16xf32>
    %14 = arith.addf %10, %13 : vector<8x8x16xf32>
    %15 = math.tanh %14 : vector<8x8x16xf32>
    %c0_11 = arith.constant 0 : index
    %c0_12 = arith.constant 0 : index
    %16 = vector.load %arg6[%c0_11, %c0_12] : memref<1x16xf32, #tpu.memory_space<vmem>>, vector<1x16xf32>
    %17 = vector.shape_cast %16 : vector<1x16xf32> to vector<1x1x16xf32>
    %18 = vector.broadcast %17 : vector<1x1x16xf32> to vector<8x8x16xf32>
    %19 = arith.mulf %15, %18 : vector<8x8x16xf32>
    %cst_13 = arith.constant dense<0.000000e+00> : vector<8x8xf32>
    %20 = vector.multi_reduction <add>, %19, %cst_13 [2] : vector<8x8x16xf32> to vector<8x8xf32>
    %21 = vector.shape_cast %20 : vector<8x8xf32> to vector<8x8x1xf32>
    %c0_14 = arith.constant 0 : index
    %c0_15 = arith.constant 0 : index
    %c0_16 = arith.constant 0 : index
    %22 = vector.load %arg7[%c0_14, %c0_15, %c0_16] : memref<1x8x1xf32, #tpu.memory_space<vmem>>, vector<1x8x1xf32>
    %23 = vector.broadcast %22 : vector<1x8x1xf32> to vector<8x8x1xf32>
    %24 = arith.addf %21, %23 : vector<8x8x1xf32>
    %cst_17 = arith.constant dense<0xFF800000> : vector<8x1xf32>
    %25 = vector.multi_reduction <maximumf>, %24, %cst_17 [1] : vector<8x8x1xf32> to vector<8x1xf32>
    %26 = vector.shape_cast %25 : vector<8x1xf32> to vector<8x1x1xf32>
    %27 = vector.broadcast %26 : vector<8x1x1xf32> to vector<8x8x1xf32>
    %28 = arith.subf %24, %27 : vector<8x8x1xf32>
    %29 = math.exp %28 : vector<8x8x1xf32>
    %cst_18 = arith.constant dense<0.000000e+00> : vector<8x1xf32>
    %30 = vector.multi_reduction <add>, %29, %cst_18 [1] : vector<8x8x1xf32> to vector<8x1xf32>
    %31 = vector.shape_cast %30 : vector<8x1xf32> to vector<8x1x1xf32>
    %32 = vector.broadcast %31 : vector<8x1x1xf32> to vector<8x8x1xf32>
    %33 = arith.divf %29, %32 : vector<8x8x1xf32>
    %c0_19 = arith.constant 0 : index
    %c0_20 = arith.constant 0 : index
    %c0_21 = arith.constant 0 : index
    %34 = vector.load %arg2[%c0_19, %c0_20, %c0_21] : memref<8x8x32xbf16, #tpu.memory_space<vmem>>, vector<8x8x32xbf16>
    %35 = arith.extf %34 : vector<8x8x32xbf16> to vector<8x8x32xf32>
    %36 = vector.broadcast %33 : vector<8x8x1xf32> to vector<8x8x32xf32>
    %37 = arith.mulf %35, %36 : vector<8x8x32xf32>
    %cst_22 = arith.constant dense<0.000000e+00> : vector<8x32xf32>
    %38 = vector.multi_reduction <add>, %37, %cst_22 [1] : vector<8x8x32xf32> to vector<8x32xf32>
    %c0_23 = arith.constant 0 : index
    %c0_24 = arith.constant 0 : index
    %39 = vector.load %arg8[%c0_23, %c0_24] : memref<8x32xf32, #tpu.memory_space<vmem>>, vector<8x32xf32>
    tpu.vector_store %arg8[%c0_23, %c0_24], %38 {strides = array<i32>} : memref<8x32xf32, #tpu.memory_space<vmem>>, vector<8x32xf32>,
    return
  }
  func.func @transform_0(%arg0: i32) -> (i32, i32) {
    %c0_i32 = arith.constant 0 : i32
    %c0_i32_0 = arith.constant 0 : i32
    return %arg0, %c0_i32 : i32, i32
  }
  func.func @transform_1(%arg0: i32) -> (i32, i32, i32) {
    %c0_i32 = arith.constant 0 : i32
    %c0_i32_0 = arith.constant 0 : i32
    %c0_i32_1 = arith.constant 0 : i32
    return %arg0, %c0_i32, %c0_i32_0 : i32, i32, i32
  }
  func.func @transform_2(%arg0: i32) -> (i32, i32) {
    %c0_i32 = arith.constant 0 : i32
    %c0_i32_0 = arith.constant 0 : i32
    %c0_i32_1 = arith.constant 0 : i32
    return %c0_i32, %c0_i32_0 : i32, i32
  }
  func.func @transform_3(%arg0: i32) -> (i32, i32) {
    %c0_i32 = arith.constant 0 : i32
    %c0_i32_0 = arith.constant 0 : i32
    %c0_i32_1 = arith.constant 0 : i32
    return %c0_i32, %c0_i32_0 : i32, i32
  }
  func.func @transform_4(%arg0: i32) -> (i32, i32) {
    %c0_i32 = arith.constant 0 : i32
    %c0_i32_0 = arith.constant 0 : i32
    %c0_i32_1 = arith.constant 0 : i32
    return %c0_i32, %c0_i32_0 : i32, i32
  }
  func.func @transform_5(%arg0: i32) -> (i32, i32) {
    %c0_i32 = arith.constant 0 : i32
    %c0_i32_0 = arith.constant 0 : i32
    %c0_i32_1 = arith.constant 0 : i32
    return %c0_i32, %c0_i32_0 : i32, i32
  }
  func.func @transform_6(%arg0: i32) -> (i32, i32, i32) {
    %c0_i32 = arith.constant 0 : i32
    %c0_i32_0 = arith.constant 0 : i32
    %c0_i32_1 = arith.constant 0 : i32
    %c0_i32_2 = arith.constant 0 : i32
    return %c0_i32, %c0_i32_0, %c0_i32_1 : i32, i32, i32
  }
  func.func @transform_7(%arg0: i32) -> (i32, i32) {
    %c0_i32 = arith.constant 0 : i32
    %c0_i32_0 = arith.constant 0 : i32
    return %arg0, %c0_i32 : i32, i32
  }
}

</mosaic_0001>

<bundles_post_ra>
// kernel: tpu_custom_call.1
= control target key start
LH: loop header
LB: loop body
LE: loop exit
PB: predicated region body
PF: predicated region fallthrough
CT: control target
= control target key end

     0   :  { %12 = vsyncpa [#allocation3], 0  ;;  %s1321_s0 = inlined_call_operand.hbm [shape: bf16[8,32], index: 0, kind: input, shape index: {}]   ;;  %s1322_s1 = inlined_call_operand.hbm [shape: bf16[8,8,32], index: 1, kind: input, shape index: {}]   ;;  %s1323_s2 = inlined_call_operand.hbm [shape: bf16[32,16], index: 2, kind: input, shape index: {}]   ;;  %s1324_s3 = inlined_call_operand.hbm [shape: bf16[32,16], index: 3, kind: input, shape index: {}]   ;;  %s1325_s4 = inlined_call_operand.hbm [shape: f32[1,16], index: 4, kind: input, shape index: {}]   ;;  %s1326_s5 = inlined_call_operand.hbm [shape: f32[1,16], index: 5, kind: input, shape index: {}]   ;;  %s1327_s6 = inlined_call_operand.hbm [shape: f32[1,8,1], index: 6, kind: input, shape index: {}]   ;;  %s1328_s7 = inlined_call_operand.hbm [shape: f32[8,32], index: 7, kind: output, shape index: {}]  }
   0x1   :  { %13 = vsyncpa [#allocation6], 0 }
   0x2   :  { %14 = vsyncpa [#allocation9], 0 }
   0x3   :  { %15 = vsyncpa [#allocation12], 0 }
   0x4   :  { %16 = vsyncpa [#allocation4], 0  ;;  %s1080_s24 = smov [#allocation5]   ;;  %s894_s28 = scalar_lea.hbm %s1322_s1, 512 }
   0x5   :  { %s32_s25 = sshll.u32 %s1080_s24, 4  ;;  %p895_p0 = scmp.ne.s32.totalorder %s1322_s1, %s894_s28  ;;  %s33_s25 = int_to_ptr.vmem [resolvable:$true] %s32_s25 }
   0x6   :  { %p898_p1 = scmp.lt.u32.totalorder %s894_s28, %s1322_s1 }
   0x8   :  { %p900_p2 = pnand %p898_p1, %p895_p0 }
   0xa   :  { %903 = shalt.err (!%p900_p2)
}
   0xb   :  { %s904_s10 = scalar_lea.vmem %s33_s25, 512  ;;  %p909_p4 = scmp.lt.s32.totalorder %s33_s25, %s33_s25 }
   0xc   :  { %p905_p3 = scmp.ne.s32.totalorder %s33_s25, %s904_s10  ;;  %p910_p5 = scmp.lt.s32.totalorder %s904_s10, %s904_s10 }
   0xe   :  { %p911_p6 = por %p910_p5, %p909_p4 }
  0x10   :  { %p912_p7 = pnand %p911_p6, %p905_p3 }
  0x12   :  { %915 = shalt.err (!%p912_p7)
}
  0x13   :  { %s1081_s11 = smov 64   ;;  %s1082_s12 = smov 4  }
  0x14   :  { %38 = dma.hbm_to_vmem [thread:$0]  %s1322_s1, 512, %s33_s25, [#allocation6], %s1081_s11, %s1081_s11, %s1082_s12  }
  0x15   :  { %s1083_s15 = smov [#allocation8]   ;;  %s1084_s17 = smov [#allocation11]  }
  0x16   :  { %s56_s16 = sshll.u32 %s1083_s15, 4  ;;  %s79_s18 = sshll.u32 %s1084_s17, 4  ;;  %s57_s16 = int_to_ptr.vmem [resolvable:$true] %s56_s16  ;;  %s80_s18 = int_to_ptr.vmem [resolvable:$true] %s79_s18 }
  0x17   :  { %s916_s21 = scalar_lea.hbm %s1324_s3, 256 }
  0x18   :  { %p917_p8 = scmp.ne.s32.totalorder %s1324_s3, %s916_s21  ;;  %p920_p9 = scmp.lt.u32.totalorder %s916_s21, %s1324_s3 }
  0x1a   :  { %p922_p10 = pnand %p920_p9, %p917_p8 }
  0x1c   :  { %925 = shalt.err (!%p922_p10)
}
  0x1d   :  { %s926_s1 = scalar_lea.vmem %s57_s16, 256  ;;  %p931_p12 = scmp.lt.s32.totalorder %s57_s16, %s57_s16 }
  0x1e   :  { %p927_p11 = scmp.ne.s32.totalorder %s57_s16, %s926_s1  ;;  %p932_p13 = scmp.lt.s32.totalorder %s926_s1, %s926_s1 }
  0x20   :  { %p933_p0 = por %p932_p13, %p931_p12 }
  0x22   :  { %p934_p1 = pnand %p933_p0, %p927_p11 }
  0x24   :  { %937 = shalt.err (!%p934_p1)
}
  0x25   :  { %62 = dma.hbm_to_vmem [thread:$0]  %s1324_s3, 256, %s57_s16, [#allocation9], %s1081_s11, %s1081_s11, %s1082_s12  }
  0x26   :  { %s938_s30 = scalar_lea.hbm %s1326_s5, 16 }
  0x27   :  { %p939_p2 = scmp.ne.s32.totalorder %s1326_s5, %s938_s30  ;;  %p942_p3 = scmp.lt.u32.totalorder %s938_s30, %s1326_s5 }
  0x29   :  { %p944_p4 = pnand %p942_p3, %p939_p2 }
  0x2b   :  { %947 = shalt.err (!%p944_p4)
}
  0x2c   :  { %s948_s14 = scalar_lea.vmem %s80_s18, 16  ;;  %s952_s15 = scalar_lea.vmem %s80_s18, 32 }
  0x2d   :  { %p949_p5 = scmp.ne.s32.totalorder %s80_s18, %s948_s14  ;;  %p953_p6 = scmp.lt.s32.totalorder %s80_s18, %s80_s18 }
  0x2e   :  { %p954_p7 = scmp.lt.s32.totalorder %s952_s15, %s948_s14 }
  0x30   :  { %p955_p8 = por %p954_p7, %p953_p6 }
  0x32   :  { %p956_p9 = pnand %p955_p8, %p949_p5 }
  0x34   :  { %959 = shalt.err (!%p956_p9)
}
  0x35   :  { %82 = dma.hbm_to_vmem [thread:$0]  %s1326_s5, 16, %s80_s18, [#allocation12]  }
  0x36   :  { %s1085_s17 = smov [#allocation2]   ;;  %s1086_s20 = smov [#allocation7]  }
  0x37   :  { %s23_s19 = sshll.u32 %s1085_s17, 4  ;;  %s44_s21 = sshll.u32 %s1086_s20, 4  ;;  %s24_s19 = int_to_ptr.vmem [resolvable:$true] %s23_s19  ;;  %s45_s21 = int_to_ptr.vmem [resolvable:$true] %s44_s21 }
  0x38   :  { %s960_s24 = scalar_lea.hbm %s1321_s0, 64 }
  0x39   :  { %p961_p10 = scmp.ne.s32.totalorder %s1321_s0, %s960_s24  ;;  %p964_p11 = scmp.lt.u32.totalorder %s960_s24, %s1321_s0 }
  0x3b   :  { %p966_p12 = pnand %p964_p11, %p961_p10 }
  0x3d   :  { %969 = shalt.err (!%p966_p12)
}
  0x3e   :  { %s970_s5 = scalar_lea.vmem %s24_s19, 64  ;;  %p975_p0 = scmp.lt.s32.totalorder %s24_s19, %s24_s19 }
  0x3f   :  { %p971_p13 = scmp.ne.s32.totalorder %s24_s19, %s970_s5  ;;  %p976_p1 = scmp.lt.s32.totalorder %s970_s5, %s970_s5 }
  0x41   :  { %p977_p2 = por %p976_p1, %p975_p0 }
  0x43   :  { %p978_p3 = pnand %p977_p2, %p971_p13 }
  0x45   :  { %981 = shalt.err (!%p978_p3)
}
  0x46   :  { %26 = dma.hbm_to_vmem [thread:$0]  %s1321_s0, 64, %s24_s19, [#allocation3]  }
  0x47   :  { %s982_s8 = scalar_lea.hbm %s1323_s2, 256 }
  0x48   :  { %p983_p4 = scmp.ne.s32.totalorder %s1323_s2, %s982_s8  ;;  %p986_p5 = scmp.lt.u32.totalorder %s982_s8, %s1323_s2 }
  0x4a   :  { %p988_p6 = pnand %p986_p5, %p983_p4 }
  0x4c   :  { %991 = shalt.err (!%p988_p6)
}
  0x4d   :  { %s992_s15 = scalar_lea.vmem %s45_s21, 256  ;;  %p997_p8 = scmp.lt.s32.totalorder %s45_s21, %s45_s21 }
  0x4e   :  { %p993_p7 = scmp.ne.s32.totalorder %s45_s21, %s992_s15  ;;  %p998_p9 = scmp.lt.s32.totalorder %s992_s15, %s992_s15 }
  0x50   :  { %p999_p10 = por %p998_p9, %p997_p8 }
  0x52   :  { %p1000_p11 = pnand %p999_p10, %p993_p7 }
  0x54   :  { %1003 = shalt.err (!%p1000_p11)
}
  0x55   :  { %50 = dma.hbm_to_vmem [thread:$0]  %s1323_s2, 256, %s45_s21, [#allocation6], %s1081_s11, %s1081_s11, %s1082_s12  }
  0x56   :  { %s1087_s16 = smov [#allocation10]   ;;  %s1088_s19 = smov [#allocation13]  }
  0x57   :  { %s69_s17 = sshll.u32 %s1087_s16, 4  ;;  %s89_s20 = sshll.u32 %s1088_s19, 4  ;;  %s70_s17 = int_to_ptr.vmem [resolvable:$true] %s69_s17  ;;  %s90_s20 = int_to_ptr.vmem [resolvable:$true] %s89_s20 }
  0x58   :  { %s1004_s24 = scalar_lea.hbm %s1325_s4, 16 }
  0x59   :  { %p1005_p12 = scmp.ne.s32.totalorder %s1325_s4, %s1004_s24  ;;  %p1008_p13 = scmp.lt.u32.totalorder %s1004_s24, %s1325_s4 }
  0x5b   :  { %p1010_p0 = pnand %p1008_p13, %p1005_p12 }
  0x5d   :  { %1013 = shalt.err (!%p1010_p0)
}
  0x5e   :  { %s1014_s2 = scalar_lea.vmem %s70_s17, 16  ;;  %s1018_s11 = scalar_lea.vmem %s70_s17, 32 }
  0x5f   :  { %p1015_p1 = scmp.ne.s32.totalorder %s70_s17, %s1014_s2  ;;  %p1019_p2 = scmp.lt.s32.totalorder %s70_s17, %s70_s17 }
  0x60   :  { %p1020_p3 = scmp.lt.s32.totalorder %s1018_s11, %s1014_s2 }
  0x62   :  { %p1021_p4 = por %p1020_p3, %p1019_p2 }
  0x64   :  { %p1022_p5 = pnand %p1021_p4, %p1015_p1 }
  0x66   :  { %1025 = shalt.err (!%p1022_p5)
}
  0x67   :  { %72 = dma.hbm_to_vmem [thread:$0]  %s1325_s4, 16, %s70_s17, [#allocation9]  }
  0x68   :  { %s1026_s28 = scalar_lea.hbm %s1327_s6, 128 }
  0x69   :  { %p1027_p6 = scmp.ne.s32.totalorder %s1327_s6, %s1026_s28  ;;  %p1030_p7 = scmp.lt.u32.totalorder %s1026_s28, %s1327_s6 }
  0x6b   :  { %p1032_p8 = pnand %p1030_p7, %p1027_p6 }
  0x6d   :  { %1035 = shalt.err (!%p1032_p8)
}
  0x6e   :  { %s1036_s10 = scalar_lea.vmem %s90_s20, 128  ;;  %p1041_p10 = scmp.lt.s32.totalorder %s90_s20, %s90_s20 }
  0x6f   :  { %p1037_p9 = scmp.ne.s32.totalorder %s90_s20, %s1036_s10  ;;  %p1042_p11 = scmp.lt.s32.totalorder %s1036_s10, %s1036_s10 }
  0x71   :  { %p1043_p12 = por %p1042_p11, %p1041_p10 }
  0x73   :  { %p1044_p13 = pnand %p1043_p12, %p1037_p9 }
  0x75   :  { %1047 = shalt.err (!%p1044_p13)
}
  0x76   :  { %92 = dma.hbm_to_vmem [thread:$0]  %s1327_s6, 128, %s90_s20, [#allocation12]  }
  0x77   :  { %1070 = dma.done.wait [#allocation3], 64  }
  0x78   :  { %1071 = vsyncadd [#allocation3], 4294967232 }
  0x79   :  { %1072 = dma.done.wait [#allocation6], 768  }
  0x7a   :  { %1073 = vsyncadd [#allocation6], 4294966528 }
  0x7b   :  { %1074 = dma.done.wait [#allocation9], 272  }
  0x7c   :  { %1075 = vsyncadd [#allocation9], 4294967024 }
  0x7d   :  { %1076 = dma.done.wait [#allocation12], 144  }
  0x7e   :  { %1077 = vsyncadd [#allocation12], 4294967152  ;;  %v1089_v0 = vmov 0.0   ;;  %vm1090_vm0 = vmmov 0   ;;  %v834_v1 = vld [vmem:[#allocation8] sm:$0xff]   ;;  %v835_v2 = vld [vmem:[#allocation7] sm:$0xff]   ;;  %v302_v12 = vlaneseq }
  0x7f   :  { %810 = vmatprep.subr.bf16.mxu1 %v1089_v0  ;;  %814 = vmatprep.mubr.msk.bf16.mxu1 %vm1090_vm0, %v1089_v0  ;;  %v836_v3 = vld [vmem:[#allocation8 + $0x8] sm:$0xff]   ;;  %v837_v4 = vld [vmem:[#allocation7 + $0x8] sm:$0xff]   ;;  %v1227_v5 = vld [vmem:[#allocation5] sm:$0xff]   ;;  %vm159_vm1 = vcmask 261120   ;;  %v1091_v10 = vmov 1966171168  }
  0x80   :  { %798 = vmatprep.subr.bf16.mxu0 %v834_v1  ;;  %811 = vmatpush3.bf16.msra.mxu1 %v835_v2  ;;  %v1229_v6 = vld [vmem:[#allocation5 + $0x8] sm:$0xff]   ;;  %v1231_v7 = vld [vmem:[#allocation5 + $0x10] sm:$0xff]   ;;  %v237_v8 = vld [vmem:[#allocation2] sm:$0xf]  ;;  %v300_v11 = vunpack.c.l.s4 %v1091_v10  ;;  %v303_v14 = vshrl.u32 %v302_v12, 7  ;;  %vm433_vm2 = vcmask 130048  }
  0x81   :  { %799 = vmatpush3.bf16.msra.mxu0 %v834_v1  ;;  %812 = vmatprep.subr.bf16.mxu1 %v1089_v0  ;;  %v1240_v9 = vld [vmem:[#allocation5 + $0x18] sm:$0xff]   ;;  %v787_v36 = vld [vmem:[#allocation10] ss:$0 sm:$0xff]  ;;  %vm467_vm3 = vcmask 7168   ;;  %vm740_vm4 = vcmask 1041409   ;;  %vm742_vm5 = vcmask 1042434  }
  0x82   :  { %800 = vmatprep.subr.bf16.mxu0 %v836_v3  ;;  %802 = vmatprep.mubr.msk.bf16.mxu0 %vm159_vm1, %v1227_v5  ;;  %v301_v13 = vunpack.c.0.s8 %v300_v11  ;;  %v349_v22 = vsub.s32 0, %v303_v14  ;;  %vm744_vm6 = vcmask 1043459   ;;  %vm746_vm7 = vcmask 1044484   ;;  %s1093_s6 = smov [#allocation14]  }
  0x83   :  { %vm748_vm8 = vcmask 1045509   ;;  %vm750_vm9 = vcmask 1046534   ;;  %s762_s14 = sshll.u32 %s1093_s6, 4  ;;  %vm752_vm10 = vcmask 1047559   ;;  %s763_s14 = int_to_ptr.vmem [resolvable:$true] %s762_s14 }
  0x84   :  { %813 = vmatpush3.bf16.msra.mxu1 %v837_v4  ;;  %v304_v15 = vsub.s32 %v301_v13, %v303_v14  ;;  %s1048_s15 = scalar_lea.vmem %s763_s14, 128  ;;  %p1053_p1 = scmp.lt.s32.totalorder %s763_s14, %s763_s14 }
  0x85   :  { %801 = vmatpush3.bf16.msra.mxu0 %v836_v3  ;;  %v788_v3 = vld [vmem:[#allocation11] ss:$0 sm:$0xff]  ;;  %p1049_p0 = scmp.ne.s32.totalorder %s763_s14, %s1048_s15  ;;  %p1054_p2 = scmp.lt.s32.totalorder %s1048_s15, %s1048_s15 }
  0x87   :  { %815 = vmatmul.mubr.msk.bf16.vlgmr.msra.gmra.mrb[0].mxu1 %vm159_vm1, %v237_v8  ;;  %p1055_p3 = por %p1054_p2, %p1053_p1 }
  0x88   :  { %803 = vmatmul.mubr.msk.bf16.vlgmr.msra.gmra.mrb[0].mxu0 %vm159_vm1, %v1229_v6 }
  0x89   :  { %806 = vmatprep.mubr.msk.bf16.mxu0 %vm159_vm1, %v1231_v7  ;;  %p1056_p4 = pnand %p1055_p3, %p1049_p0 }
  0x90   :  { %807 = vmatmul.mubr.msk.bf16.gmra.mrb[4].mxu0 %vm159_vm1, %v1240_v9 }
 0x15a   :  { %v291_v16 = vpop.f32.mrb[0].mxu1 }
 0x15b   :  { %v804_v17 = vpop.f32.mrb[0].mxu0  ;;  %v298_v18 = vcombine.high %v291_v16, %v291_v16  ;;  %v305_v19 = vrot.slane %v291_v16, %v304_v15  ;;  %v816_v20 = vpop.f32.mrb[1].mxu1 }
 0x15c   :  { %v206_v21 = vpop.f32.mrb[1].mxu0  ;;  %v294_v23 = vpop.f32.mrb[2].mxu1 }
 0x15d   :  { %v805_v24 = vpop.f32.mrb[2].mxu0  ;;  %v312_v25 = vrot.slane %v298_v18, %v304_v15  ;;  %v313_v26 = vcombine.high %v305_v19, %v305_v19  ;;  %v321_v27 = vrot.slane %v305_v19, %v304_v15  ;;  %v817_v28 = vpop.f32.mrb[3].mxu1 }
 0x15e   :  { %v209_v29 = vpop.f32.mrb[3].mxu0 }
 0x15f   :  { %v314_v30 = vcombine.high %v312_v25, %v312_v25  ;;  %v328_v31 = vrot.slane %v312_v25, %v304_v15  ;;  %v335_v32 = vrot.slane %v313_v26, %v304_v15  ;;  %v343_v33 = vcombine.high %v321_v27, %v321_v27 }
 0x160   :  { %v350_v34 = vrot.slane %v321_v27, %v349_v22 }
 0x161   :  { %v358_v35 = vrot.slane %v343_v33, %v349_v22  ;;  %v345_v37 = vcombine.high %v335_v32, %v335_v32  ;;  %v354_v38 = vrot.slane %v335_v32, %v349_v22  ;;  %v344_v39 = vcombine.high %v328_v31, %v328_v31  ;;  %v458_v33 = vld [vmem:[#allocation13] sm:$0xff] }
 0x162   :  { %v387_v40 = vadd.f32 %v350_v34, %v206_v21  ;;  %v366_v42 = vrot.slane %v328_v31, %v349_v22  ;;  %v342_v43 = vrot.slane %v314_v30, %v304_v15  ;;  %v1092_v32 = vmov 0  }
 0x163   :  { %v808_v41 = vpop.f32.mrb[4].mxu0  ;;  %v389_v44 = vadd.f32 %v804_v17, %v358_v35  ;;  %v362_v45 = vrot.slane %v345_v37, %v349_v22  ;;  %v388_v46 = vadd.f32 %v354_v38, %v209_v29  ;;  %v374_v47 = vrot.slane %v344_v39, %v349_v22  ;;  %832 = vset.pattern.permute.xlu0 %v1092_v32 }
 0x164   :  { %v222_v48 = vpop.f32.mrb[5].mxu0  ;;  %v402_v49 = vadd.f32 %v787_v36, %v387_v40  ;;  %v346_v52 = vcombine.high %v342_v43, %v342_v43  ;;  %v370_v53 = vrot.slane %v342_v43, %v349_v22  ;;  %833 = vset.pattern.permute.xlu1 %v1092_v32 }
 0x165   :  { %v391_v50 = vadd.f32 %v366_v42, %v222_v48  ;;  %v809_v51 = vpop.f32.mrb[6].mxu0  ;;  %v404_v54 = vadd.f32 %v787_v36, %v389_v44  ;;  %v390_v55 = vadd.f32 %v805_v24, %v362_v45  ;;  %v403_v56 = vadd.f32 %v787_v36, %v388_v46 }
 0x166   :  { %v393_v57 = vadd.f32 %v808_v41, %v374_v47  ;;  %v225_v58 = vpop.f32.mrb[7].mxu0  ;;  %846 = vtanh.f32 %v402_v49  ;;  %v378_v59 = vrot.slane %v346_v52, %v349_v22 }
 0x167   :  { %v392_v60 = vadd.f32 %v370_v53, %v225_v58  ;;  %848 = vtanh.f32 %v404_v54  ;;  %v405_v61 = vadd.f32 %v787_v36, %v390_v55  ;;  %v406_v62 = vadd.f32 %v787_v36, %v391_v50 }
 0x168   :  { %850 = vtanh.f32 %v403_v56  ;;  %v394_v63 = vadd.f32 %v809_v51, %v378_v59  ;;  %v408_v1 = vadd.f32 %v787_v36, %v393_v57 }
 0x169   :  { %852 = vtanh.f32 %v405_v61  ;;  %v407_v0 = vadd.f32 %v787_v36, %v392_v60 }
 0x16a   :  { %854 = vtanh.f32 %v406_v62  ;;  %v409_v2 = vadd.f32 %v787_v36, %v394_v63 }
 0x16b   :  { %856 = vtanh.f32 %v407_v0 }
 0x16c   :  { %858 = vtanh.f32 %v408_v1 }
 0x16d   :  { %860 = vtanh.f32 %v409_v2 }
 0x170   :  { %v847_v4 = vpop.eup %846 }
 0x171   :  { %v849_v8 = vpop.eup %848  ;;  %v425_v10 = vmul.f32 %v847_v4, %v788_v3 }
 0x172   :  { %v851_v11 = vpop.eup %850  ;;  %v427_v12 = vmul.f32 %v849_v8, %v788_v3 }
 0x173   :  { %v853_v13 = vpop.eup %852  ;;  %v434_v14 = vsel %vm433_vm2, %v425_v10, 0.0  ;;  %v426_v15 = vmul.f32 %v851_v11, %v788_v3 }
 0x174   :  { %435 = vadd.xlane.f32.xlu0 %v434_v14  ;;  %v440_v16 = vsel %vm433_vm2, %v427_v12, 0.0  ;;  %v428_v17 = vmul.f32 %v853_v13, %v788_v3  ;;  %v855_v18 = vpop.eup %854 }
 0x175   :  { %441 = vadd.xlane.f32.xlu1 %v440_v16  ;;  %v857_v19 = vpop.eup %856  ;;  %v437_v20 = vsel %vm433_vm2, %v426_v15, 0.0  ;;  %v429_v21 = vmul.f32 %v855_v18, %v788_v3 }
 0x176   :  { %v859_v22 = vpop.eup %858  ;;  %v443_v23 = vsel %vm433_vm2, %v428_v17, 0.0  ;;  %v430_v24 = vmul.f32 %v857_v19, %v788_v3 }
 0x177   :  { %v861_v25 = vpop.eup %860  ;;  %v446_v26 = vsel %vm433_vm2, %v429_v21, 0.0  ;;  %v431_v27 = vmul.f32 %v859_v22, %v788_v3 }
 0x178   :  { %438 = vadd.xlane.f32.xlu0 %v437_v20  ;;  %v449_v28 = vsel %vm433_vm2, %v430_v24, 0.0  ;;  %v432_v29 = vmul.f32 %v861_v25, %v788_v3 }
 0x179   :  { %444 = vadd.xlane.f32.xlu1 %v443_v23  ;;  %v452_v30 = vsel %vm433_vm2, %v431_v27, 0.0 }
 0x17a   :  { %v455_v31 = vsel %vm433_vm2, %v432_v29, 0.0 }
 0x17c   :  { %447 = vadd.xlane.f32.xlu0 %v446_v26 }
 0x17d   :  { %450 = vadd.xlane.f32.xlu1 %v449_v28 }
 0x180   :  { %453 = vadd.xlane.f32.xlu0 %v452_v30 }
 0x181   :  { %456 = vadd.xlane.f32.xlu1 %v455_v31 }
 0x201   :  { %v436_v34 = vpop.xlane.xlu0 %435 }
 0x202   :  { %v459_v35 = vadd.f32 %v458_v33, %v436_v34  ;;  %v442_v36 = vpop.xlane.xlu1 %441 }
 0x203   :  { %v461_v37 = vadd.f32 %v458_v33, %v442_v36 }
 0x204   :  { %v468_v38 = vsel %vm467_vm3, %v459_v35, -inf }
 0x205   :  { %v469_v39 = vrot.slane %v468_v38, 4  ;;  %v482_v40 = vsel %vm467_vm3, %v461_v37, -inf  ;;  %v439_v41 = vpop.xlane.xlu0 %438 }
 0x206   :  { %v483_v42 = vrot.slane %v482_v40, 4  ;;  %v460_v43 = vadd.f32 %v458_v33, %v439_v41  ;;  %v445_v44 = vpop.xlane.xlu1 %444 }
 0x207   :  { %v470_v45 = vmax.f32 %v468_v38, %v469_v39  ;;  %v462_v46 = vadd.f32 %v458_v33, %v445_v44 }
 0x208   :  { %v484_v47 = vmax.f32 %v482_v40, %v483_v42  ;;  %v475_v48 = vsel %vm467_vm3, %v460_v43, -inf }
 0x209   :  { %v471_v49 = vrot.slane %v470_v45, 2  ;;  %v476_v50 = vrot.slane %v475_v48, 4  ;;  %v489_v51 = vsel %vm467_vm3, %v462_v46, -inf  ;;  %v448_v52 = vpop.xlane.xlu0 %447 }
 0x20a   :  { %v485_v53 = vrot.slane %v484_v47, 2  ;;  %v490_v54 = vrot.slane %v489_v51, 4  ;;  %v463_v55 = vadd.f32 %v458_v33, %v448_v52  ;;  %v451_v56 = vpop.xlane.xlu1 %450 }
 0x20b   :  { %v472_v57 = vmax.f32 %v470_v45, %v471_v49  ;;  %v477_v58 = vmax.f32 %v475_v48, %v476_v50  ;;  %v464_v59 = vadd.f32 %v458_v33, %v451_v56 }
 0x20c   :  { %v486_v60 = vmax.f32 %v484_v47, %v485_v53  ;;  %v491_v61 = vmax.f32 %v489_v51, %v490_v54  ;;  %v496_v62 = vsel %vm467_vm3, %v463_v55, -inf }
 0x20d   :  { %v473_v63 = vrot.slane %v472_v57, 1  ;;  %v478_v0 = vrot.slane %v477_v58, 2  ;;  %v497_v1 = vrot.slane %v496_v62, 4  ;;  %v503_v2 = vsel %vm467_vm3, %v464_v59, -inf  ;;  %v454_v3 = vpop.xlane.xlu0 %453 }
 0x20e   :  { %v487_v4 = vrot.slane %v486_v60, 1  ;;  %v492_v8 = vrot.slane %v491_v61, 2  ;;  %v504_v10 = vrot.slane %v503_v2, 4  ;;  %v465_v11 = vadd.f32 %v458_v33, %v454_v3  ;;  %v457_v12 = vpop.xlane.xlu1 %456 }
 0x20f   :  { %v474_v13 = vmax.f32 %v472_v57, %v473_v63  ;;  %v479_v14 = vmax.f32 %v477_v58, %v478_v0  ;;  %v498_v15 = vmax.f32 %v496_v62, %v497_v1  ;;  %v466_v16 = vadd.f32 %v458_v33, %v457_v12 }
 0x210   :  { %v488_v17 = vmax.f32 %v486_v60, %v487_v4  ;;  %v493_v18 = vmax.f32 %v491_v61, %v492_v8  ;;  %v505_v19 = vmax.f32 %v503_v2, %v504_v10  ;;  %v510_v20 = vsel %vm467_vm3, %v465_v11, -inf }
 0x211   :  { %v524_v21 = vsub.f32 %v459_v35, %v474_v13  ;;  %v480_v22 = vrot.slane %v479_v14, 1  ;;  %v499_v23 = vrot.slane %v498_v15, 2  ;;  %v511_v24 = vrot.slane %v510_v20, 4 }
 0x212   :  { %v526_v25 = vsub.f32 %v461_v37, %v488_v17  ;;  %v494_v26 = vrot.slane %v493_v18, 1  ;;  %v506_v27 = vrot.slane %v505_v19, 2  ;;  %v517_v28 = vsel %vm467_vm3, %v466_v16, -inf }
 0x213   :  { %v532_v29 = vmul.f32 1.442695, %v524_v21  ;;  %v481_v30 = vmax.f32 %v479_v14, %v480_v22  ;;  %v500_v31 = vmax.f32 %v498_v15, %v499_v23  ;;  %v512_v32 = vmax.f32 %v510_v20, %v511_v24 }
 0x214   :  { %v536_v34 = vmul.f32 1.442695, %v526_v25  ;;  %v495_v33 = vmax.f32 %v493_v18, %v494_v26  ;;  %v507_v36 = vmax.f32 %v505_v19, %v506_v27  ;;  %v518_v38 = vrot.slane %v517_v28, 4 }
 0x215   :  { %862 = vpow2.f32 %v532_v29  ;;  %v525_v39 = vsub.f32 %v460_v43, %v481_v30  ;;  %v501_v40 = vrot.slane %v500_v31, 1  ;;  %v513_v35 = vrot.slane %v512_v32, 2 }
 0x216   :  { %864 = vpow2.f32 %v536_v34  ;;  %v527_v41 = vsub.f32 %v462_v46, %v495_v33  ;;  %v508_v42 = vrot.slane %v507_v36, 1  ;;  %v519_v37 = vmax.f32 %v517_v28, %v518_v38 }
 0x217   :  { %v534_v44 = vmul.f32 1.442695, %v525_v39  ;;  %v502_v45 = vmax.f32 %v500_v31, %v501_v40  ;;  %v514_v47 = vmax.f32 %v512_v32, %v513_v35 }
 0x218   :  { %v538_v48 = vmul.f32 1.442695, %v527_v41  ;;  %v509_v49 = vmax.f32 %v507_v36, %v508_v42  ;;  %v520_v50 = vrot.slane %v519_v37, 2 }
 0x219   :  { %866 = vpow2.f32 %v534_v44  ;;  %v528_v51 = vsub.f32 %v463_v55, %v502_v45  ;;  %v515_v52 = vrot.slane %v514_v47, 1 }
 0x21a   :  { %868 = vpow2.f32 %v538_v48  ;;  %v529_v53 = vsub.f32 %v464_v59, %v509_v49  ;;  %v521_v54 = vmax.f32 %v519_v37, %v520_v50 }
 0x21b   :  { %v540_v56 = vmul.f32 1.442695, %v528_v51  ;;  %v516_v43 = vmax.f32 %v514_v47, %v515_v52 }
 0x21c   :  { %v542_v57 = vmul.f32 1.442695, %v529_v53  ;;  %v522_v58 = vrot.slane %v521_v54, 1 }
 0x21d   :  { %870 = vpow2.f32 %v540_v56  ;;  %v530_v46 = vsub.f32 %v465_v11, %v516_v43 }
 0x21e   :  { %872 = vpow2.f32 %v542_v57  ;;  %v523_v60 = vmax.f32 %v521_v54, %v522_v58 }
 0x21f   :  { %v1260_v61 = vpop.eup %862  ;;  %v544_v62 = vmul.f32 1.442695, %v530_v46 }
 0x220   :  { %v1262_v63 = vpop.eup %864  ;;  %v548_v55 = vsel %vm467_vm3, %v1260_v61, 0.0  ;;  %v531_v0 = vsub.f32 %v466_v16, %v523_v60 }
 0x221   :  { %v549_v1 = vrot.slane %v548_v55, 4  ;;  %v562_v59 = vsel %vm467_vm3, %v1262_v63, 0.0  ;;  %874 = vpow2.f32 %v544_v62 }
 0x222   :  { %v563_v2 = vrot.slane %v562_v59, 4  ;;  %v546_v3 = vmul.f32 1.442695, %v531_v0 }
 0x223   :  { %v1268_v4 = vpop.eup %866  ;;  %v550_v8 = vadd.f32 %v549_v1, %v548_v55 }
 0x224   :  { %v1270_v10 = vpop.eup %868  ;;  %v564_v11 = vadd.f32 %v563_v2, %v562_v59  ;;  %v555_v12 = vsel %vm467_vm3, %v1268_v4, 0.0  ;;  %876 = vpow2.f32 %v546_v3 }
 0x225   :  { %v551_v13 = vrot.slane %v550_v8, 2  ;;  %v556_v14 = vrot.slane %v555_v12, 4  ;;  %v569_v15 = vsel %vm467_vm3, %v1270_v10, 0.0 }
 0x226   :  { %v565_v16 = vrot.slane %v564_v11, 2  ;;  %v570_v17 = vrot.slane %v569_v15, 4 }
 0x227   :  { %v1276_v18 = vpop.eup %870  ;;  %v557_v19 = vadd.f32 %v556_v14, %v555_v12  ;;  %v552_v20 = vadd.f32 %v551_v13, %v550_v8 }
 0x228   :  { %v1278_v21 = vpop.eup %872  ;;  %v571_v22 = vadd.f32 %v570_v17, %v569_v15  ;;  %v576_v23 = vsel %vm467_vm3, %v1276_v18, 0.0  ;;  %v566_v24 = vadd.f32 %v565_v16, %v564_v11 }
 0x229   :  { %v558_v25 = vrot.slane %v557_v19, 2  ;;  %v577_v26 = vrot.slane %v576_v23, 4  ;;  %v583_v27 = vsel %vm467_vm3, %v1278_v21, 0.0  ;;  %v553_v28 = vrot.slane %v552_v20, 1 }
 0x22a   :  { %v572_v29 = vrot.slane %v571_v22, 2  ;;  %v584_v30 = vrot.slane %v583_v27, 4  ;;  %v567_v31 = vrot.slane %v566_v24, 1 }
 0x22b   :  { %v875_v32 = vpop.eup %874  ;;  %v578_v34 = vadd.f32 %v577_v26, %v576_v23  ;;  %v554_v33 = vadd.f32 %v553_v28, %v552_v20  ;;  %v559_v36 = vadd.f32 %v558_v25, %v557_v19  ;;  %v621_v25 = vunpack.c.h.bf16 %v1227_v5 }
 0x22c   :  { %v590_v38 = vsel %vm467_vm3, %v875_v32, 0.0  ;;  %v573_v39 = vadd.f32 %v572_v29, %v571_v22  ;;  %v585_v37 = vadd.f32 %v584_v30, %v583_v27  ;;  %v568_v44 = vadd.f32 %v567_v31, %v566_v24 }
 0x22d   :  { %v579_v40 = vrot.slane %v578_v34, 2  ;;  %v591_v35 = vrot.slane %v590_v38, 4  ;;  %878 = vrcp.f32 %v554_v33  ;;  %v560_v41 = vrot.slane %v559_v36, 1 }
 0x22e   :  { %v877_v42 = vpop.eup %876  ;;  %v574_v45 = vrot.slane %v573_v39, 1  ;;  %v586_v53 = vrot.slane %v585_v37, 2 }
 0x22f   :  { %v592_v47 = vadd.f32 %v591_v35, %v590_v38  ;;  %v597_v48 = vsel %vm467_vm3, %v877_v42, 0.0  ;;  %v561_v49 = vadd.f32 %v560_v41, %v559_v36  ;;  %v580_v50 = vadd.f32 %v579_v40, %v578_v34 }
 0x230   :  { %v598_v51 = vrot.slane %v597_v48, 4  ;;  %v575_v56 = vadd.f32 %v574_v45, %v573_v39  ;;  %v587_v58 = vadd.f32 %v586_v53, %v585_v37  ;;  %v624_v40 = vunpack.c.l.bf16 %v1231_v7 }
 0x231   :  { %v593_v52 = vrot.slane %v592_v47, 2  ;;  %880 = vrcp.f32 %v561_v49  ;;  %v581_v43 = vrot.slane %v580_v50, 1 }
 0x232   :  { %882 = vrcp.f32 %v568_v44  ;;  %v599_v54 = vadd.f32 %v598_v51, %v597_v48  ;;  %v588_v2 = vrot.slane %v587_v58, 1 }
 0x233   :  { %v594_v57 = vadd.f32 %v593_v52, %v592_v47  ;;  %884 = vrcp.f32 %v575_v56  ;;  %v582_v62 = vadd.f32 %v581_v43, %v580_v50  ;;  %v625_v43 = vunpack.c.h.bf16 %v1231_v7 }
 0x234   :  { %v600_v60 = vrot.slane %v599_v54, 2  ;;  %v589_v12 = vadd.f32 %v588_v2, %v587_v58 }
 0x235   :  { %v595_v55 = vrot.slane %v594_v57, 1  ;;  %886 = vrcp.f32 %v582_v62 }
 0x236   :  { %v601_v3 = vadd.f32 %v600_v60, %v599_v54 }
 0x237   :  { %v879_v46 = vpop.eup %878  ;;  %v596_v59 = vadd.f32 %v595_v55, %v594_v57 }
 0x238   :  { %v605_v0 = vmul.f32 %v879_v46, %v1260_v61  ;;  %v602_v13 = vrot.slane %v601_v3, 1 }
 0x239   :  { %888 = vrcp.f32 %v596_v59 }
 0x23a   :  { %630 = vperm.xlu0 %832, %v605_v0   ;;  %890 = vrcp.f32 %v589_v12  ;;  %v603_v16 = vadd.f32 %v602_v13, %v601_v3  ;;  %v627_v3 = vunpack.c.h.bf16 %v1240_v9 }
 0x23b   :  { %v881_v1 = vpop.eup %880 }
 0x23c   :  { %v883_v8 = vpop.eup %882  ;;  %v607_v11 = vmul.f32 %v881_v1, %v1268_v4  ;;  %892 = vrcp.f32 %v603_v16 }
 0x23d   :  { %v609_v14 = vmul.f32 %v883_v8, %v1262_v63  ;;  %v885_v15 = vpop.eup %884 }
 0x23e   :  { %635 = vperm.xlu1 %833, %v607_v11   ;;  %v611_v61 = vmul.f32 %v885_v15, %v1270_v10  ;;  %v620_v10 = vunpack.c.l.bf16 %v1227_v5 }
 0x23f   :  { %v887_v17 = vpop.eup %886 }
 0x240   :  { %v613_v19 = vmul.f32 %v887_v17, %v1276_v18  ;;  %v622_v18 = vunpack.c.l.bf16 %v1229_v6 }
 0x242   :  { %640 = vperm.xlu1 %833, %v609_v14  }
 0x243   :  { %v889_v20 = vpop.eup %888 }
 0x244   :  { %v617_v4 = vmul.f32 %v889_v20, %v875_v32  ;;  %v891_v22 = vpop.eup %890 }
 0x245   :  { %v615_v23 = vmul.f32 %v891_v22, %v1278_v21  ;;  %v623_v21 = vunpack.c.h.bf16 %v1229_v6  ;;  %v626_v6 = vunpack.c.l.bf16 %v1240_v9 }
 0x246   :  { %645 = vperm.xlu1 %833, %v611_v61   ;;  %v893_v24 = vpop.eup %892 }
 0x247   :  { %v619_v63 = vmul.f32 %v893_v24, %v877_v42 }
 0x24a   :  { %650 = vperm.xlu1 %833, %v613_v19  }
 0x24e   :  { %660 = vperm.xlu1 %833, %v617_v4  }
 0x252   :  { %655 = vperm.xlu1 %833, %v615_v23  }
 0x256   :  { %665 = vperm.xlu1 %833, %v619_v63  }
 0x2b9   :  { %v631_v26 = vpop.permute.xlu0 %630 }
 0x2ba   :  { %v668_v29 = vmul.f32 %v631_v26, %v620_v10 }
 0x2bc   :  { %v676_v34 = vsel %vm159_vm1, %v668_v29, 0.0 }
 0x2bd   :  { %v636_v27 = vpop.permute.xlu1 %635  ;;  %v677_v35 = vrot.slane %v676_v34, 4 }
 0x2be   :  { %v669_v28 = vmul.f32 %v636_v27, %v621_v25 }
 0x2bf   :  { %v678_v48 = vadd.f32 %v677_v35, %v676_v34 }
 0x2c0   :  { %v683_v31 = vsel %vm159_vm1, %v669_v28, 0.0 }
 0x2c1   :  { %v641_v30 = vpop.permute.xlu1 %640  ;;  %v684_v36 = vrot.slane %v683_v31, 4  ;;  %v679_v57 = vrot.slane %v678_v48, 2 }
 0x2c2   :  { %v670_v32 = vmul.f32 %v641_v30, %v622_v18 }
 0x2c3   :  { %v685_v42 = vadd.f32 %v684_v36, %v683_v31  ;;  %v680_v8 = vadd.f32 %v679_v57, %v678_v48 }
 0x2c4   :  { %v690_v33 = vsel %vm159_vm1, %v670_v32, 0.0 }
 0x2c5   :  { %v646_v38 = vpop.permute.xlu1 %645  ;;  %v691_v39 = vrot.slane %v690_v33, 4  ;;  %v686_v51 = vrot.slane %v685_v42, 2  ;;  %v681_v20 = vrot.slane %v680_v8, 1 }
 0x2c6   :  { %v671_v5 = vmul.f32 %v646_v38, %v623_v21 }
 0x2c7   :  { %v692_v45 = vadd.f32 %v691_v39, %v690_v33  ;;  %v687_v62 = vadd.f32 %v686_v51, %v685_v42  ;;  %v682_v27 = vadd.f32 %v681_v20, %v680_v8 }
 0x2c8   :  { %v697_v41 = vsel %vm159_vm1, %v671_v5, 0.0 }
 0x2c9   :  { %v698_v37 = vrot.slane %v697_v41, 4  ;;  %v651_v44 = vpop.permute.xlu1 %650  ;;  %v693_v54 = vrot.slane %v692_v45, 2  ;;  %v688_v7 = vrot.slane %v687_v62, 1 }
 0x2ca   :  { %v672_v47 = vmul.f32 %v651_v44, %v624_v40 }
 0x2cb   :  { %v699_v49 = vadd.f32 %v698_v37, %v697_v41  ;;  %v694_v59 = vadd.f32 %v693_v54, %v692_v45  ;;  %v689_v63 = vadd.f32 %v688_v7, %v687_v62 }
 0x2cc   :  { %v704_v50 = vsel %vm159_vm1, %v672_v47, 0.0 }
 0x2cd   :  { %v705_v52 = vrot.slane %v704_v50, 4  ;;  %v661_v53 = vpop.permute.xlu1 %660  ;;  %v700_v58 = vrot.slane %v699_v49, 2  ;;  %v695_v61 = vrot.slane %v694_v59, 1  ;;  %v741_v31 = vsel %vm740_vm4, %v689_v63, %v682_v27 }
 0x2ce   :  { %v674_v56 = vmul.f32 %v661_v53, %v626_v6 }
 0x2cf   :  { %v706_v46 = vadd.f32 %v705_v52, %v704_v50  ;;  %v701_v11 = vadd.f32 %v700_v58, %v699_v49  ;;  %v696_v10 = vadd.f32 %v695_v61, %v694_v59 }
 0x2d0   :  { %v718_v60 = vsel %vm159_vm1, %v674_v56, 0.0 }
 0x2d1   :  { %v707_v55 = vrot.slane %v706_v46, 2  ;;  %v719_v0 = vrot.slane %v718_v60, 4  ;;  %v656_v1 = vpop.permute.xlu1 %655  ;;  %v702_v4 = vrot.slane %v701_v11, 1  ;;  %v743_v34 = vsel %vm742_vm5, %v696_v10, %v741_v31 }
 0x2d2   :  { %v673_v2 = vmul.f32 %v656_v1, %v625_v43 }
 0x2d3   :  { %v720_v12 = vadd.f32 %v719_v0, %v718_v60  ;;  %v708_v13 = vadd.f32 %v707_v55, %v706_v46  ;;  %v703_v28 = vadd.f32 %v702_v4, %v701_v11 }
 0x2d4   :  { %v711_v14 = vsel %vm159_vm1, %v673_v2, 0.0 }
 0x2d5   :  { %v712_v15 = vrot.slane %v711_v14, 4  ;;  %v666_v16 = vpop.permute.xlu1 %665  ;;  %v721_v17 = vrot.slane %v720_v12, 2  ;;  %v709_v23 = vrot.slane %v708_v13, 1  ;;  %v745_v36 = vsel %vm744_vm6, %v703_v28, %v743_v34 }
 0x2d6   :  { %v675_v19 = vmul.f32 %v666_v16, %v627_v3 }
 0x2d7   :  { %v713_v22 = vadd.f32 %v712_v15, %v711_v14  ;;  %v722_v26 = vadd.f32 %v721_v17, %v720_v12  ;;  %v710_v30 = vadd.f32 %v709_v23, %v708_v13 }
 0x2d8   :  { %v725_v24 = vsel %vm159_vm1, %v675_v19, 0.0 }
 0x2d9   :  { %v714_v9 = vrot.slane %v713_v22, 2  ;;  %v726_v25 = vrot.slane %v725_v24, 4  ;;  %v723_v33 = vrot.slane %v722_v26, 1  ;;  %v747_v5 = vsel %vm746_vm7, %v710_v30, %v745_v36 }
 0x2db   :  { %v715_v18 = vadd.f32 %v714_v9, %v713_v22  ;;  %v727_v29 = vadd.f32 %v726_v25, %v725_v24  ;;  %v724_v41 = vadd.f32 %v723_v33, %v722_v26 }
 0x2dd   :  { %v716_v32 = vrot.slane %v715_v18, 1  ;;  %v728_v21 = vrot.slane %v727_v29, 2 }
 0x2df   :  { %v717_v38 = vadd.f32 %v716_v32, %v715_v18  ;;  %v729_v39 = vadd.f32 %v728_v21, %v727_v29 }
 0x2e1   :  { %v730_v40 = vrot.slane %v729_v39, 1  ;;  %v749_v35 = vsel %vm748_vm8, %v717_v38, %v747_v5 }
 0x2e2   :  { %v751_v37 = vsel %vm750_vm9, %v724_v41, %v749_v35 }
 0x2e3   :  { %v731_v42 = vadd.f32 %v730_v40, %v729_v39 }
 0x2e5   :  { %v753_v44 = vsel %vm752_vm10, %v731_v42, %v751_v37 }
 0x2e6   :  { %755 = vst.msk [vmem:[#allocation14] sm:$0xff] %vm159_vm1, %v753_v44 }
 0x2e7   :  { %1059 = shalt.err (!%p1056_p4)
}
 0x2e8   :  { %s1060_s16 = scalar_lea.hbm %s1328_s7, 128 }
 0x2e9   :  { %p1061_p5 = scmp.ne.s32.totalorder %s1328_s7, %s1060_s16  ;;  %p1064_p6 = scmp.lt.u32.totalorder %s1060_s16, %s1328_s7 }
 0x2eb   :  { %p1066_p7 = pnand %p1064_p6, %p1061_p5 }
 0x2ed   :  { %1069 = shalt.err (!%p1066_p7)
}
 0x2ee   :  { %765 = dma.vmem_to_hbm [thread:$0]  %s763_s14, 128, %s1328_s7, [#allocation4]  }
 0x2ef   :  { %1078 = dma.done.wait [#allocation4], 128  }
 0x2f0   :  { %1079 = vsyncadd [#allocation4], 4294967168 }
 0x2f1   :  { %769 = vsyncpa [#allocation3], 1 }
 0x2f2   :  { %770 = vsyncpa [#allocation6], 1 }
 0x2f3   :  { %771 = vsyncpa [#allocation9], 1 }
 0x2f4   :  { %772 = vsyncpa [#allocation12], 1 }
 0x2f5   :  { %773 = vsyncpa [#allocation4], 1 }

</bundles_post_ra>
